<compile_context>
chip_gen: v6e
topology: v6e:2x2x1
jax: 0.10.0
libtpu: 0.0.40
codegen_flags: <defaults>
</compile_context>

<pallas_src>
import functools

import jax
import jax.numpy as jnp
import numpy as np
from jax.experimental import pallas as pl
from jax.experimental.pallas import tpu as pltpu


def _round_up(x, m):
    return (x + m - 1) // m * m


# --------------------------------------------------------------------------
# Fused Pallas kernel: whole TCN for one batch element
# --------------------------------------------------------------------------
def fused_tcn_kernel(x_ref, convw_ref, dsw_ref, bias_ref, linw_ref, linb_ref,
                     o_ref, hist, *, block_meta, K, L, Cpad, hist_pad):
    """Ref shapes:
         x_ref     (1, L, Cpad)            f32
         convw_ref (n_convs, K*Cpad, Cpad) bf16   im2col conv weights
         dsw_ref   (max(n_ds,1), Cpad, Cpad) bf16 downsample weights (dummy if n_ds==0)
         bias_ref  (n_bias, Cpad)          f32    b1,b2[,bd] per block, in order
         linw_ref  (Cpad, Cout_pad)        bf16
         linb_ref  (1, Cout_pad)           f32
         o_ref     (1, L, Cout_pad)
         hist      (hist_pad + L_pad, Cpad) bf16  scratch (zero causal pad rows)
    """
    # Zero the causal-history rows.  Done every grid step: with a megacore-split
    # "parallel" batch axis, gating on program_id(0)==0 would leave core 1's
    # scratch uninitialized.  Cost: one tiny (hist_pad, Cpad) bf16 store.
    hist[0:hist_pad, :] = jnp.zeros((hist_pad, Cpad), hist.dtype)

    def dilated_causal_conv(h_f32, conv_idx, bias_idx, dilation):
        # y[t] = b + sum_j h[t - j*dilation] @ w_tap[K-1-j]
        # Write the activation once (bf16, sublane-aligned offset), read each
        # tap as a static slice off the zero-padded history scratch.
        hist[hist_pad:hist_pad + L, :] = h_f32.astype(hist.dtype)
        cols = [hist[hist_pad - j * dilation: hist_pad - j * dilation + L, :]
                for j in range(K)]
        if Cpad >= 256:
            # Contraction already fills the MXU: K accumulating dots skip the
            # (L, K*Cpad) im2col materialization (v7x MRB accumulates in place).
            y = jnp.zeros((L, Cpad), jnp.float32)
            for j in range(K):
                y = y + jnp.dot(cols[j],
                                convw_ref[conv_idx, j * Cpad:(j + 1) * Cpad, :],
                                preferred_element_type=jnp.float32)
        else:
            im2col = cols[0] if K == 1 else jnp.concatenate(cols, axis=1)
            y = jnp.dot(im2col, convw_ref[conv_idx],
                        preferred_element_type=jnp.float32)
        return y + bias_ref[bias_idx:bias_idx + 1, :]

    h = x_ref[0].astype(jnp.float32)                      # (L, Cpad) f32

    conv_idx = 0
    bias_idx = 0
    ds_idx = 0
    for dilation, has_downsample in block_meta:
        u = jnp.maximum(dilated_causal_conv(h, conv_idx, bias_idx, dilation), 0.0)
        u = jnp.maximum(dilated_causal_conv(u, conv_idx + 1, bias_idx + 1,
                                            dilation), 0.0)
        conv_idx += 2
        bias_idx += 2
        if has_downsample:
            res = (jnp.dot(h.astype(dsw_ref.dtype), dsw_ref[ds_idx],
                           preferred_element_type=jnp.float32)
                   + bias_ref[bias_idx:bias_idx + 1, :])
            ds_idx += 1
            bias_idx += 1
        else:
            res = h
        h = jnp.maximum(u + res, 0.0)                     # f32 VPU epilogue

    y = (jnp.dot(h.astype(linw_ref.dtype), linw_ref[...],
                 preferred_element_type=jnp.float32)
         + linb_ref[...])
    o_ref[0] = y.astype(o_ref.dtype)


# --------------------------------------------------------------------------
# Wrapper: packs / lane-pads params (weights pre-cast to bf16) and launches
# --------------------------------------------------------------------------
def tcn_forward(index, medicine, params, *, compute_dtype=jnp.bfloat16):
    """Matches TCN.forward: cat(dim=2) -> transpose -> TemporalConvNet ->
    transpose -> Linear (transposes absorbed into channels-last layout)."""
    x = jnp.concatenate([index, medicine], axis=2)        # (B, L, input_size)
    B, L, Cin = x.shape

    blocks = params["blocks"]
    K = blocks[0]["w1"].shape[0]
    output_size = params["lin_w"].shape[1]

    # Common lane-padded channel width for all activations.
    widths = [Cin] + [blk["w1"].shape[2] for blk in blocks]
    Cpad = _round_up(max(widths), 128)
    Cout_pad = _round_up(output_size, 128)

    max_pad = max((K - 1) * int(blk["dilation"]) for blk in blocks)
    # bf16 history packs 16 rows per sublane word -> align the main write.
    hist_pad = max(16, _round_up(max_pad, 16))
    hist_rows = hist_pad + _round_up(L, 16)

    def pad2(a, r, c):
        return jnp.pad(a, ((0, r - a.shape[0]), (0, c - a.shape[1])))

    x_p = jnp.pad(x, ((0, 0), (0, 0), (0, Cpad - Cin)))

    conv_ws, ds_ws, biases, block_meta = [], [], [], []
    for blk in blocks:
        d = int(blk["dilation"])
        has_ds = bool(blk["has_downsample"])
        block_meta.append((d, has_ds))
        Kk, cin, cout = blk["w1"].shape
        # im2col weight: row-block j (shift j*d) multiplies tap K-1-j.
        w1p = jnp.pad(blk["w1"], ((0, 0), (0, Cpad - cin), (0, Cpad - cout)))
        w2p = jnp.pad(blk["w2"], ((0, 0), (0, Cpad - cout), (0, Cpad - cout)))
        conv_ws.append(jnp.concatenate([w1p[Kk - 1 - j] for j in range(Kk)], axis=0))
        conv_ws.append(jnp.concatenate([w2p[Kk - 1 - j] for j in range(Kk)], axis=0))
        biases.append(pad2(blk["b1"], 1, Cpad))
        biases.append(pad2(blk["b2"], 1, Cpad))
        if has_ds:
            ds_ws.append(pad2(blk["wd"], Cpad, Cpad))
            biases.append(pad2(blk["bd"], 1, Cpad))

    # Packed, bf16 MXU operands (casting here, once, is numerically identical
    # to casting inside the kernel right before the dot).
    conv_w = jnp.stack(conv_ws, axis=0).astype(compute_dtype)   # (n_convs, K*Cpad, Cpad)
    if ds_ws:
        ds_w = jnp.stack(ds_ws, axis=0).astype(compute_dtype)   # (n_ds, Cpad, Cpad)
    else:
        ds_w = jnp.zeros((1, Cpad, Cpad), compute_dtype)        # dummy, never read
    bias_all = jnp.concatenate(biases, axis=0)                  # (n_bias, Cpad) f32
    lin_w = pad2(params["lin_w"], Cpad, Cout_pad).astype(compute_dtype)
    lin_b = pad2(params["lin_b"], 1, Cout_pad)                  # f32

    # Explicit scoped-VMEM budget (params double-buffered by the pipeline,
    # x/out blocks double-buffered, hist scratch, matmul temporaries), with
    # generous headroom but clamped well below physical VMEM.
    def _nbytes(a):
        return int(np.prod(a.shape)) * jnp.dtype(a.dtype).itemsize
    param_bytes = sum(_nbytes(a) for a in (conv_w, ds_w, bias_all, lin_w, lin_b))
    io_bytes = L * Cpad * 4 + L * Cout_pad * 4
    hist_bytes = hist_rows * Cpad * 2
    tmp_bytes = L * K * Cpad * 2 + 8 * L * Cpad * 4 + 2 * L * Cout_pad * 4
    vmem_est = 2 * (param_bytes + io_bytes) + hist_bytes + tmp_bytes
    vmem_limit = int(min(max(2 * vmem_est + (4 << 20), 32 << 20), 100 << 20))

    kernel = functools.partial(
        fused_tcn_kernel,
        block_meta=tuple(block_meta), K=K, L=L, Cpad=Cpad, hist_pad=hist_pad)

    out = pl.pallas_call(
        kernel,
        out_shape=jax.ShapeDtypeStruct((B, L, Cout_pad), x.dtype),
        grid=(B,),
        in_specs=[
            pl.BlockSpec((1, L, Cpad), lambda b: (b, 0, 0)),
            pl.BlockSpec(conv_w.shape, lambda b: (0, 0, 0)),
            pl.BlockSpec(ds_w.shape, lambda b: (0, 0, 0)),
            pl.BlockSpec(bias_all.shape, lambda b: (0, 0)),
            pl.BlockSpec(lin_w.shape, lambda b: (0, 0)),
            pl.BlockSpec(lin_b.shape, lambda b: (0, 0)),
        ],
        out_specs=pl.BlockSpec((1, L, Cout_pad), lambda b: (b, 0, 0)),
        scratch_shapes=[pltpu.VMEM((hist_rows, Cpad), compute_dtype)],
        compiler_params=pltpu.CompilerParams(
            dimension_semantics=("parallel",),
            vmem_limit_bytes=vmem_limit),
    )(x_p, conv_w, ds_w, bias_all, lin_w, lin_b)

    return out[:, :, :output_size]


# --------------------------------------------------------------------------
# Deterministic parameter init (synthetic — weight_norm folds into the weight)
# --------------------------------------------------------------------------
def init_params(key, input_size, n_channel, n_kernel, output_size):
    blocks = []
    cin = input_size
    for i, cout in enumerate(n_channel):
        key, k1, k2, k3, k4, k5, k6 = jax.random.split(key, 7)
        has_ds = cin != cout
        blk = {
            "dilation": 2 ** i,
            "has_downsample": has_ds,
            "w1": 0.1 * jax.random.normal(k1, (n_kernel, cin, cout), jnp.float32),
            "b1": 0.1 * jax.random.normal(k2, (1, cout), jnp.float32),
            "w2": 0.1 * jax.random.normal(k3, (n_kernel, cout, cout), jnp.float32),
            "b2": 0.1 * jax.random.normal(k4, (1, cout), jnp.float32),
            "wd": (0.1 * jax.random.normal(k5, (cin, cout), jnp.float32)
                   if has_ds else None),
            "bd": (0.1 * jax.random.normal(k6, (1, cout), jnp.float32)
                   if has_ds else None),
        }
        blocks.append(blk)
        cin = cout
    key, kw, kb = jax.random.split(key, 3)
    # self.linear.weight.data.normal_(0, 0.01); stored transposed as (Cin, Cout)
    lin_w = 0.01 * jax.random.normal(kw, (n_channel[-1], output_size), jnp.float32)
    lin_b = 0.1 * jax.random.normal(kb, (1, output_size), jnp.float32)
    return {"blocks": blocks, "lin_w": lin_w, "lin_b": lin_b}


# --------------------------------------------------------------------------
# Pure-JAX f32 reference (correctness check)
# --------------------------------------------------------------------------
def _ref_causal_conv(x, w, b, dilation):
    K, _, cout = w.shape
    B, L, _ = x.shape
    pad = (K - 1) * dilation
    xp = jnp.pad(x, ((0, 0), (pad, 0), (0, 0)))
    out = jnp.zeros((B, L, cout), jnp.float32)
    for k in range(K):
        out = out + jnp.einsum("blc,cd->bld",
                               xp[:, k * dilation:k * dilation + L, :], w[k])
    return out + b[None]


def ref_tcn(index, medicine, params):
    x = jnp.concatenate([index, medicine], axis=2)
    h = x
    for p in params["blocks"]:
        d = p["dilation"]
        u = jax.nn.relu(_ref_causal_conv(h, p["w1"], p["b1"], d))
        u = jax.nn.relu(_ref_causal_conv(u, p["w2"], p["b2"], d))
        if p["has_downsample"]:
            res = jnp.einsum("blc,cd->bld", h, p["wd"]) + p["bd"][None]
        else:
            res = h
        h = jax.nn.relu(u + res)
    return jnp.einsum("blc,co->blo", h, params["lin_w"]) + params["lin_b"][None]


# --------------------------------------------------------------------------
if __name__ == "__main__":
    B, L = 2, 16
    idx_feat, med_feat = 3, 5
    input_size = idx_feat + med_feat            # cat([index, medicine], dim=2)
    n_channel = [16, 16]
    n_kernel = 2
    output_size = 4

    params = init_params(jax.random.PRNGKey(0),
                         input_size, n_channel, n_kernel, output_size)

    k_idx, k_med = jax.random.split(jax.random.PRNGKey(1))
    index = jax.random.normal(k_idx, (B, L, idx_feat), jnp.float32)
    medicine = jax.random.normal(k_med, (B, L, med_feat), jnp.float32)

    out = tcn_forward(index, medicine, params)
    out = jax.block_until_ready(out)
    assert out.shape == (B, L, output_size)

    # bf16 MXU operands (f32 accumulation) -> loosened tolerance vs f32 ref.
    ref = ref_tcn(index, medicine, params)
    np.testing.assert_allclose(np.asarray(out), np.asarray(ref),
                               rtol=5e-2, atol=5e-2)
    print("KERNEL_OK")
</pallas_src>

<mosaic_0001>
module attributes {stable_mosaic.version = 11 : i64} {
  func.func @fused_tcn_kernel(%arg0: i32, %arg1: memref<1x16x128xf32, #tpu.memory_space<vmem>>, %arg2: memref<4x256x128xbf16, #tpu.memory_space<vmem>>, %arg3: memref<1x128x128xbf16, #tpu.memory_space<vmem>>, %arg4: memref<5x128xf32, #tpu.memory_space<vmem>>, %arg5: memref<128x128xbf16, #tpu.memory_space<vmem>>, %arg6: memref<1x128xf32, #tpu.memory_space<vmem>>, %arg7: memref<1x16x128xf32, #tpu.memory_space<vmem>>, %arg8: memref<32x128xbf16, #tpu.memory_space<vmem>>) attributes {dimension_semantics = [#tpu.dimension_semantics<parallel>], iteration_bounds = array<i64: 2>, scalar_prefetch = 0 : i64, scratch_operands = 1 : i64, tpu.core_type = #tpu.core_type<tc>, window_params = [{transform_indices = @transform_0, window_bounds = array<i64: 1, 16, 128>}, {pipeline_mode = #tpu.pipeline_mode<synchronous>, transform_indices = @transform_1, window_bounds = array<i64: 4, 256, 128>}, {pipeline_mode = #tpu.pipeline_mode<synchronous>, transform_indices = @transform_2, window_bounds = array<i64: 1, 128, 128>}, {pipeline_mode = #tpu.pipeline_mode<synchronous>, transform_indices = @transform_3, window_bounds = array<i64: 5, 128>}, {pipeline_mode = #tpu.pipeline_mode<synchronous>, transform_indices = @transform_4, window_bounds = array<i64: 128, 128>}, {pipeline_mode = #tpu.pipeline_mode<synchronous>, transform_indices = @transform_5, window_bounds = array<i64: 1, 128>}, {transform_indices = @transform_6, window_bounds = array<i64: 1, 16, 128>}]} {
    %cst = arith.constant 0.000000e+00 : bf16
    %0 = vector.broadcast %cst : bf16 to vector<16x128xbf16>
    %c0 = arith.constant 0 : index
    %c0_0 = arith.constant 0 : index
    %1 = vector.load %arg8[%c0, %c0_0] : memref<32x128xbf16, #tpu.memory_space<vmem>>, vector<16x128xbf16>
    tpu.vector_store %arg8[%c0, %c0_0], %0 {strides = array<i32>} : memref<32x128xbf16, #tpu.memory_space<vmem>>, vector<16x128xbf16>,
    %c0_1 = arith.constant 0 : index
    %c0_2 = arith.constant 0 : index
    %c0_3 = arith.constant 0 : index
    %2 = vector.load %arg1[%c0_1, %c0_2, %c0_3] : memref<1x16x128xf32, #tpu.memory_space<vmem>>, vector<1x16x128xf32>
    %3 = vector.shape_cast %2 : vector<1x16x128xf32> to vector<16x128xf32>
    %4 = arith.truncf %3 : vector<16x128xf32> to vector<16x128xbf16>
    %c16 = arith.constant 16 : index
    %c0_4 = arith.constant 0 : index
    %5 = vector.load %arg8[%c16, %c0_4] : memref<32x128xbf16, #tpu.memory_space<vmem>>, vector<16x128xbf16>
    tpu.vector_store %arg8[%c16, %c0_4], %4 {strides = array<i32>} : memref<32x128xbf16, #tpu.memory_space<vmem>>, vector<16x128xbf16>,
    %c16_5 = arith.constant 16 : index
    %c0_6 = arith.constant 0 : index
    %6 = vector.load %arg8[%c16_5, %c0_6] : memref<32x128xbf16, #tpu.memory_space<vmem>>, vector<16x128xbf16>
    %c15 = arith.constant 15 : index
    %c0_7 = arith.constant 0 : index
    %7 = vector.load %arg8[%c15, %c0_7] : memref<32x128xbf16, #tpu.memory_space<vmem>>, vector<16x128xbf16>
    %8 = tpu.concatenate %6, %7 in 1 : vector<16x128xbf16>, vector<16x128xbf16> -> vector<16x256xbf16>
    %c0_8 = arith.constant 0 : index
    %c0_9 = arith.constant 0 : index
    %c0_10 = arith.constant 0 : index
    %9 = vector.load %arg2[%c0_8, %c0_9, %c0_10] : memref<4x256x128xbf16, #tpu.memory_space<vmem>>, vector<1x256x128xbf16>
    %10 = vector.shape_cast %9 : vector<1x256x128xbf16> to vector<256x128xbf16>
    %cst_11 = arith.constant dense<0.000000e+00> : vector<16x128xf32>
    %11 = tpu.matmul %8, %10, %cst_11 {dimension_numbers = #tpu.dot_dimension_numbers<[1], [0], [0], [1], [0, 0, 1, 1], [], []>} : vector<16x256xbf16>, vector<256x128xbf16>, vector<16x128xf32> -> vector<16x128xf32>
    %c0_12 = arith.constant 0 : index
    %c0_13 = arith.constant 0 : index
    %12 = vector.load %arg4[%c0_12, %c0_13] : memref<5x128xf32, #tpu.memory_space<vmem>>, vector<1x128xf32>
    %13 = vector.broadcast %12 : vector<1x128xf32> to vector<16x128xf32>
    %14 = arith.addf %11, %13 : vector<16x128xf32>
    %cst_14 = arith.constant 0.000000e+00 : f32
    %15 = vector.broadcast %cst_14 : f32 to vector<16x128xf32>
    %16 = arith.maximumf %14, %15 : vector<16x128xf32>
    %17 = arith.truncf %16 : vector<16x128xf32> to vector<16x128xbf16>
    %c16_15 = arith.constant 16 : index
    %c0_16 = arith.constant 0 : index
    %18 = vector.load %arg8[%c16_15, %c0_16] : memref<32x128xbf16, #tpu.memory_space<vmem>>, vector<16x128xbf16>
    tpu.vector_store %arg8[%c16_15, %c0_16], %17 {strides = array<i32>} : memref<32x128xbf16, #tpu.memory_space<vmem>>, vector<16x128xbf16>,
    %c16_17 = arith.constant 16 : index
    %c0_18 = arith.constant 0 : index
    %19 = vector.load %arg8[%c16_17, %c0_18] : memref<32x128xbf16, #tpu.memory_space<vmem>>, vector<16x128xbf16>
    %c15_19 = arith.constant 15 : index
    %c0_20 = arith.constant 0 : index
    %20 = vector.load %arg8[%c15_19, %c0_20] : memref<32x128xbf16, #tpu.memory_space<vmem>>, vector<16x128xbf16>
    %21 = tpu.concatenate %19, %20 in 1 : vector<16x128xbf16>, vector<16x128xbf16> -> vector<16x256xbf16>
    %c1 = arith.constant 1 : index
    %c0_21 = arith.constant 0 : index
    %c0_22 = arith.constant 0 : index
    %22 = vector.load %arg2[%c1, %c0_21, %c0_22] : memref<4x256x128xbf16, #tpu.memory_space<vmem>>, vector<1x256x128xbf16>
    %23 = vector.shape_cast %22 : vector<1x256x128xbf16> to vector<256x128xbf16>
    %cst_23 = arith.constant dense<0.000000e+00> : vector<16x128xf32>
    %24 = tpu.matmul %21, %23, %cst_23 {dimension_numbers = #tpu.dot_dimension_numbers<[1], [0], [0], [1], [0, 0, 1, 1], [], []>} : vector<16x256xbf16>, vector<256x128xbf16>, vector<16x128xf32> -> vector<16x128xf32>
    %c1_24 = arith.constant 1 : index
    %c0_25 = arith.constant 0 : index
    %25 = vector.load %arg4[%c1_24, %c0_25] : memref<5x128xf32, #tpu.memory_space<vmem>>, vector<1x128xf32>
    %26 = vector.broadcast %25 : vector<1x128xf32> to vector<16x128xf32>
    %27 = arith.addf %24, %26 : vector<16x128xf32>
    %cst_26 = arith.constant 0.000000e+00 : f32
    %28 = vector.broadcast %cst_26 : f32 to vector<16x128xf32>
    %29 = arith.maximumf %27, %28 : vector<16x128xf32>
    %30 = arith.truncf %3 : vector<16x128xf32> to vector<16x128xbf16>
    %c0_27 = arith.constant 0 : index
    %c0_28 = arith.constant 0 : index
    %c0_29 = arith.constant 0 : index
    %31 = vector.load %arg3[%c0_27, %c0_28, %c0_29] : memref<1x128x128xbf16, #tpu.memory_space<vmem>>, vector<1x128x128xbf16>
    %32 = vector.shape_cast %31 : vector<1x128x128xbf16> to vector<128x128xbf16>
    %cst_30 = arith.constant dense<0.000000e+00> : vector<16x128xf32>
    %33 = tpu.matmul %30, %32, %cst_30 {dimension_numbers = #tpu.dot_dimension_numbers<[1], [0], [0], [1], [0, 0, 1, 1], [], []>} : vector<16x128xbf16>, vector<128x128xbf16>, vector<16x128xf32> -> vector<16x128xf32>
    %c2 = arith.constant 2 : index
    %c0_31 = arith.constant 0 : index
    %34 = vector.load %arg4[%c2, %c0_31] : memref<5x128xf32, #tpu.memory_space<vmem>>, vector<1x128xf32>
    %35 = vector.broadcast %34 : vector<1x128xf32> to vector<16x128xf32>
    %36 = arith.addf %33, %35 : vector<16x128xf32>
    %37 = arith.addf %29, %36 : vector<16x128xf32>
    %cst_32 = arith.constant 0.000000e+00 : f32
    %38 = vector.broadcast %cst_32 : f32 to vector<16x128xf32>
    %39 = arith.maximumf %37, %38 : vector<16x128xf32>
    %40 = arith.truncf %39 : vector<16x128xf32> to vector<16x128xbf16>
    %c16_33 = arith.constant 16 : index
    %c0_34 = arith.constant 0 : index
    %41 = vector.load %arg8[%c16_33, %c0_34] : memref<32x128xbf16, #tpu.memory_space<vmem>>, vector<16x128xbf16>
    tpu.vector_store %arg8[%c16_33, %c0_34], %40 {strides = array<i32>} : memref<32x128xbf16, #tpu.memory_space<vmem>>, vector<16x128xbf16>,
    %c16_35 = arith.constant 16 : index
    %c0_36 = arith.constant 0 : index
    %42 = vector.load %arg8[%c16_35, %c0_36] : memref<32x128xbf16, #tpu.memory_space<vmem>>, vector<16x128xbf16>
    %c14 = arith.constant 14 : index
    %c0_37 = arith.constant 0 : index
    %43 = vector.load %arg8[%c14, %c0_37] : memref<32x128xbf16, #tpu.memory_space<vmem>>, vector<16x128xbf16>
    %44 = tpu.concatenate %42, %43 in 1 : vector<16x128xbf16>, vector<16x128xbf16> -> vector<16x256xbf16>
    %c2_38 = arith.constant 2 : index
    %c0_39 = arith.constant 0 : index
    %c0_40 = arith.constant 0 : index
    %45 = vector.load %arg2[%c2_38, %c0_39, %c0_40] : memref<4x256x128xbf16, #tpu.memory_space<vmem>>, vector<1x256x128xbf16>
    %46 = vector.shape_cast %45 : vector<1x256x128xbf16> to vector<256x128xbf16>
    %cst_41 = arith.constant dense<0.000000e+00> : vector<16x128xf32>
    %47 = tpu.matmul %44, %46, %cst_41 {dimension_numbers = #tpu.dot_dimension_numbers<[1], [0], [0], [1], [0, 0, 1, 1], [], []>} : vector<16x256xbf16>, vector<256x128xbf16>, vector<16x128xf32> -> vector<16x128xf32>
    %c3 = arith.constant 3 : index
    %c0_42 = arith.constant 0 : index
    %48 = vector.load %arg4[%c3, %c0_42] : memref<5x128xf32, #tpu.memory_space<vmem>>, vector<1x128xf32>
    %49 = vector.broadcast %48 : vector<1x128xf32> to vector<16x128xf32>
    %50 = arith.addf %47, %49 : vector<16x128xf32>
    %cst_43 = arith.constant 0.000000e+00 : f32
    %51 = vector.broadcast %cst_43 : f32 to vector<16x128xf32>
    %52 = arith.maximumf %50, %51 : vector<16x128xf32>
    %53 = arith.truncf %52 : vector<16x128xf32> to vector<16x128xbf16>
    %c16_44 = arith.constant 16 : index
    %c0_45 = arith.constant 0 : index
    %54 = vector.load %arg8[%c16_44, %c0_45] : memref<32x128xbf16, #tpu.memory_space<vmem>>, vector<16x128xbf16>
    tpu.vector_store %arg8[%c16_44, %c0_45], %53 {strides = array<i32>} : memref<32x128xbf16, #tpu.memory_space<vmem>>, vector<16x128xbf16>,
    %c16_46 = arith.constant 16 : index
    %c0_47 = arith.constant 0 : index
    %55 = vector.load %arg8[%c16_46, %c0_47] : memref<32x128xbf16, #tpu.memory_space<vmem>>, vector<16x128xbf16>
    %c14_48 = arith.constant 14 : index
    %c0_49 = arith.constant 0 : index
    %56 = vector.load %arg8[%c14_48, %c0_49] : memref<32x128xbf16, #tpu.memory_space<vmem>>, vector<16x128xbf16>
    %57 = tpu.concatenate %55, %56 in 1 : vector<16x128xbf16>, vector<16x128xbf16> -> vector<16x256xbf16>
    %c3_50 = arith.constant 3 : index
    %c0_51 = arith.constant 0 : index
    %c0_52 = arith.constant 0 : index
    %58 = vector.load %arg2[%c3_50, %c0_51, %c0_52] : memref<4x256x128xbf16, #tpu.memory_space<vmem>>, vector<1x256x128xbf16>
    %59 = vector.shape_cast %58 : vector<1x256x128xbf16> to vector<256x128xbf16>
    %cst_53 = arith.constant dense<0.000000e+00> : vector<16x128xf32>
    %60 = tpu.matmul %57, %59, %cst_53 {dimension_numbers = #tpu.dot_dimension_numbers<[1], [0], [0], [1], [0, 0, 1, 1], [], []>} : vector<16x256xbf16>, vector<256x128xbf16>, vector<16x128xf32> -> vector<16x128xf32>
    %c4 = arith.constant 4 : index
    %c0_54 = arith.constant 0 : index
    %61 = vector.load %arg4[%c4, %c0_54] : memref<5x128xf32, #tpu.memory_space<vmem>>, vector<1x128xf32>
    %62 = vector.broadcast %61 : vector<1x128xf32> to vector<16x128xf32>
    %63 = arith.addf %60, %62 : vector<16x128xf32>
    %cst_55 = arith.constant 0.000000e+00 : f32
    %64 = vector.broadcast %cst_55 : f32 to vector<16x128xf32>
    %65 = arith.maximumf %63, %64 : vector<16x128xf32>
    %66 = arith.addf %65, %39 : vector<16x128xf32>
    %cst_56 = arith.constant 0.000000e+00 : f32
    %67 = vector.broadcast %cst_56 : f32 to vector<16x128xf32>
    %68 = arith.maximumf %66, %67 : vector<16x128xf32>
    %69 = arith.truncf %68 : vector<16x128xf32> to vector<16x128xbf16>
    %c0_57 = arith.constant 0 : index
    %c0_58 = arith.constant 0 : index
    %70 = vector.load %arg5[%c0_57, %c0_58] : memref<128x128xbf16, #tpu.memory_space<vmem>>, vector<128x128xbf16>
    %cst_59 = arith.constant dense<0.000000e+00> : vector<16x128xf32>
    %71 = tpu.matmul %69, %70, %cst_59 {dimension_numbers = #tpu.dot_dimension_numbers<[1], [0], [0], [1], [0, 0, 1, 1], [], []>} : vector<16x128xbf16>, vector<128x128xbf16>, vector<16x128xf32> -> vector<16x128xf32>
    %c0_60 = arith.constant 0 : index
    %c0_61 = arith.constant 0 : index
    %72 = vector.load %arg6[%c0_60, %c0_61] : memref<1x128xf32, #tpu.memory_space<vmem>>, vector<1x128xf32>
    %73 = vector.broadcast %72 : vector<1x128xf32> to vector<16x128xf32>
    %74 = arith.addf %71, %73 : vector<16x128xf32>
    %c0_62 = arith.constant 0 : index
    %c0_63 = arith.constant 0 : index
    %c0_64 = arith.constant 0 : index
    %75 = vector.load %arg7[%c0_62, %c0_63, %c0_64] : memref<1x16x128xf32, #tpu.memory_space<vmem>>, vector<1x16x128xf32>
    %76 = vector.shape_cast %75 : vector<1x16x128xf32> to vector<16x128xf32>
    %77 = vector.shape_cast %74 : vector<16x128xf32> to vector<1x16x128xf32>
    tpu.vector_store %arg7[%c0_62, %c0_63, %c0_64], %77 {strides = array<i32>} : memref<1x16x128xf32, #tpu.memory_space<vmem>>, vector<1x16x128xf32>,
    return
  }
  func.func @transform_0(%arg0: i32) -> (i32, i32, i32) {
    %c0_i32 = arith.constant 0 : i32
    %c0_i32_0 = arith.constant 0 : i32
    %c0_i32_1 = arith.constant 0 : i32
    return %arg0, %c0_i32, %c0_i32_0 : i32, i32, i32
  }
  func.func @transform_1(%arg0: i32) -> (i32, i32, i32) {
    %c0_i32 = arith.constant 0 : i32
    %c0_i32_0 = arith.constant 0 : i32
    %c0_i32_1 = arith.constant 0 : i32
    %c0_i32_2 = arith.constant 0 : i32
    return %c0_i32, %c0_i32_0, %c0_i32_1 : i32, i32, i32
  }
  func.func @transform_2(%arg0: i32) -> (i32, i32, i32) {
    %c0_i32 = arith.constant 0 : i32
    %c0_i32_0 = arith.constant 0 : i32
    %c0_i32_1 = arith.constant 0 : i32
    %c0_i32_2 = arith.constant 0 : i32
    return %c0_i32, %c0_i32_0, %c0_i32_1 : i32, i32, i32
  }
  func.func @transform_3(%arg0: i32) -> (i32, i32) {
    %c0_i32 = arith.constant 0 : i32
    %c0_i32_0 = arith.constant 0 : i32
    %c0_i32_1 = arith.constant 0 : i32
    return %c0_i32, %c0_i32_0 : i32, i32
  }
  func.func @transform_4(%arg0: i32) -> (i32, i32) {
    %c0_i32 = arith.constant 0 : i32
    %c0_i32_0 = arith.constant 0 : i32
    %c0_i32_1 = arith.constant 0 : i32
    return %c0_i32, %c0_i32_0 : i32, i32
  }
  func.func @transform_5(%arg0: i32) -> (i32, i32) {
    %c0_i32 = arith.constant 0 : i32
    %c0_i32_0 = arith.constant 0 : i32
    %c0_i32_1 = arith.constant 0 : i32
    return %c0_i32, %c0_i32_0 : i32, i32
  }
  func.func @transform_6(%arg0: i32) -> (i32, i32, i32) {
    %c0_i32 = arith.constant 0 : i32
    %c0_i32_0 = arith.constant 0 : i32
    %c0_i32_1 = arith.constant 0 : i32
    return %arg0, %c0_i32, %c0_i32_0 : i32, i32, i32
  }
}

</mosaic_0001>

<bundles_post_ra>
// kernel: tpu_custom_call.1
= control target key start
LH: loop header
LB: loop body
LE: loop exit
PB: predicated region body
PF: predicated region fallthrough
CT: control target
= control target key end

     0   :  { %11 = vsyncpa [#allocation4], 0  ;;  %s2558_s0 = inlined_call_operand.hbm [shape: f32[2,16,128], index: 0, kind: input, shape index: {}]   ;;  %s2559_s1 = inlined_call_operand.hbm [shape: bf16[4,256,128], index: 1, kind: input, shape index: {}]   ;;  %s2560_s2 = inlined_call_operand.hbm [shape: bf16[1,128,128], index: 2, kind: input, shape index: {}]   ;;  %s2561_s3 = inlined_call_operand.hbm [shape: f32[5,128], index: 3, kind: input, shape index: {}]   ;;  %s2562_s4 = inlined_call_operand.hbm [shape: bf16[128,128], index: 4, kind: input, shape index: {}]   ;;  %s2563_s5 = inlined_call_operand.vmem [shape: f32[1,128], index: 5, kind: input, shape index: {}]   ;;  %s2564_s6 = inlined_call_operand.hbm [shape: f32[2,16,128], index: 6, kind: output, shape index: {}]  }
   0x1   :  { %13 = vsyncpa [#allocation4 + $0x1], 0 }
   0x2   :  { %14 = vsyncpa [#allocation7], 0 }
   0x3   :  { %15 = vsyncpa [#allocation10], 0 }
   0x4   :  { %16 = vsyncpa [#allocation5], 0 }
   0x5   :  { %18 = vsyncpa [#allocation5 + $0x1], 0  ;;  %s2292_s21 = smov 0   ;;  %s2294_s22 = smov 0  }
   0x6   :  { %s2296_s23 = smov 0   ;;  %s2298_s24 = smov 0  }
   0x7 LB: > { %s2313_s25 = sadd.s32 4294967295, %s2240_s24   ;;  %s1540_s26 = sadd.s32 4294967294, %s2240_s24   ;;  %s2240_s24 = sphi %s2298_s24, %s2588_s24   ;;  %s2236_s23 = sphi %s2296_s23, %s2587_s23   ;;  %s2232_s22 = sphi %s2294_s22, %s2586_s22   ;;  %s2228_s21 = sphi %s2292_s21, %s2585_s21  }
   0x8   : > { %p44_p0 = scmp.ne.s32.totalorder %s2232_s22, %s2228_s21  ;;  %p2565_p1 = scmp.eq.s32.totalorder %s2313_s25, 0 }
   0x9   : > { %p179_p3 = scmp.eq.s32.totalorder %s1540_s26, 1  ;;  %p1541_p5 = scmp.ge.s32.totalorder %s2240_s24, 1 }
   0xa   : > { %p2322_p4 = por %p2565_p1, %p44_p0  ;;  %p186_p7 = scmp.lt.s32.totalorder %s2240_s24, 3 }
   0xb   : > { %p2327_p6 = por %p179_p3, %p44_p0  ;;  %s2242_s30 = smov [#allocation6]  }
   0xc   : > { %s2569_s27 = scalar_select %p2322_p4, 1, 0 }
   0xd   : > { %s2570_s28 = scalar_select %p2327_p6, 1, 0 }
   0xe   : > { %p2332_p8 = pnand %p1541_p5, %p186_p7  ;;  %s198_s7 = sshll.u32 %s2242_s30, 4  ;;  %s199_s7 = int_to_ptr.vmem [resolvable:$true] %s198_s7 }
   0xf   : > { %s2243_s9 = smov [#allocation9]   ;;  %s2244_s11 = smov [#allocation8]  }
  0x10   : > { %s2571_s29 = scalar_select %p2332_p8, 1, 0 }
  0x11   : > { %p1868_p9 = pneg %p2332_p8  ;;  %s225_s10 = sshll.u32 %s2243_s9, 4  ;;  %s226_s10 = int_to_ptr.vmem [resolvable:$true] %s225_s10 }
  0x12   : > { %s211_s12 = sshll.u32 %s2244_s11, 4  ;;  %s2047_s13 = scalar_lea.vmem %s199_s7, 8192  ;;  %s212_s12 = int_to_ptr.vmem [resolvable:$true] %s211_s12 }
  0x13   : > { %p2341_p11 = pnand %p1868_p9, %p2565_p1  ;;  %p2048_p13 = scmp.ne.s32.totalorder %s199_s7, %s2047_s13 }
  0x14   : > { %p2055_p5 = scmp.lt.s32.totalorder %s199_s7, %s199_s7  ;;  %p2056_p7 = scmp.lt.s32.totalorder %s2047_s13, %s2047_s13 }
  0x15   : > { %p2038_p12 = pneg %p2341_p11 }
  0x16   : > { %p2057_p9 = por %p2056_p7, %p2055_p5 }
  0x17   : > { %p2050_p0 = pnand %p2048_p13, %p2038_p12 }
  0x19   : > { %p2051_p3 = pneg %p2050_p0 }
  0x1b   : > { %p2058_p10 = pnand %p2057_p9, %p2051_p3 }
  0x1d   : > { %2061 = shalt.err (!%p2058_p10)
}
  0x1e   : > { %s2245_s14 = smov 64   ;;  %s2246_s15 = smov 4  }
  0x1f   : > { %1871 = dma.hbm_to_vmem [thread:$0]  (!%p2341_p11), %s2559_s1, 8192, %s199_s7, [#allocation7], %s2245_s14, %s2245_s14, %s2246_s15  }
  0x20   : > { %s2073_s18 = scalar_lea.vmem %s226_s10, 128  ;;  %p2081_p3 = scmp.lt.s32.totalorder %s226_s10, %s226_s10 }
  0x21   : > { %p2074_p13 = scmp.ne.s32.totalorder %s226_s10, %s2073_s18  ;;  %p2082_p10 = scmp.lt.s32.totalorder %s2073_s18, %s2073_s18 }
  0x23   : > { %p2076_p0 = pnand %p2074_p13, %p2038_p12  ;;  %p2083_p7 = por %p2082_p10, %p2081_p3 }
  0x25   : > { %p2077_p5 = pneg %p2076_p0 }
  0x27   : > { %p2084_p9 = pnand %p2083_p7, %p2077_p5 }
  0x29   : > { %2087 = shalt.err (!%p2084_p9)
}
  0x2a   : > { %1877 = dma.hbm_to_vmem [thread:$0]  (!%p2341_p11), %s2561_s3, 128, %s226_s10, [#allocation10]  }
  0x2b   : > { %s2099_s26 = scalar_lea.vmem %s212_s12, 1024  ;;  %p2107_p0 = scmp.lt.s32.totalorder %s212_s12, %s212_s12 }
  0x2c   : > { %p2100_p1 = scmp.ne.s32.totalorder %s212_s12, %s2099_s26  ;;  %p2108_p6 = scmp.lt.s32.totalorder %s2099_s26, %s2099_s26 }
  0x2e   : > { %p2102_p2 = pnand %p2100_p1, %p2038_p12  ;;  %p2109_p4 = por %p2108_p6, %p2107_p0 }
  0x30   : > { %p2103_p13 = pneg %p2102_p2 }
  0x32   : > { %p2110_p3 = pnand %p2109_p4, %p2103_p13 }
  0x34   : > { %2113 = shalt.err (!%p2110_p3)
}
  0x35   : > { %1874 = dma.hbm_to_vmem [thread:$0]  (!%p2341_p11), %s2560_s2, 1024, %s212_s12, [#allocation7], %s2245_s14, %s2245_s14, %s2246_s15  }
  0x36   : > { %s2247_s9 = smov [#allocation11]  }
  0x37   : > { %s235_s10 = sshll.u32 %s2247_s9, 4  ;;  %s236_s10 = int_to_ptr.vmem [resolvable:$true] %s235_s10 }
  0x38   : > { %s2125_s11 = scalar_lea.vmem %s236_s10, 1024  ;;  %p2133_p6 = scmp.lt.s32.totalorder %s236_s10, %s236_s10 }
  0x39   : > { %p2126_p1 = scmp.ne.s32.totalorder %s236_s10, %s2125_s11  ;;  %p2134_p5 = scmp.lt.s32.totalorder %s2125_s11, %s2125_s11 }
  0x3b   : > { %p2128_p2 = pnand %p2126_p1, %p2038_p12  ;;  %p2135_p10 = por %p2134_p5, %p2133_p6 }
  0x3d   : > { %p2129_p4 = pneg %p2128_p2 }
  0x3f   : > { %p2136_p7 = pnand %p2135_p10, %p2129_p4 }
  0x41   : > { %2139 = shalt.err (!%p2136_p7)
}
  0x42   : > { %1880 = dma.hbm_to_vmem [thread:$0]  (!%p2341_p11), %s2562_s4, 1024, %s236_s10, [#allocation10], %s2245_s14, %s2245_s14, %s2246_s15  }
  0x43   : > { %s2389_s16 = sadd.s32 1, %s2240_s24   ;;  %s31_s8 = sadd.s32 1, %s2236_s23 }
  0x44   : > { %s28_s17 = ssub.s32 %s2240_s24, %s2389_s16  ;;  %p38_p12 = scmp.ne.s32.totalorder %s2236_s23, %s2232_s22 }
  0x45   : > { %p29_p9 = scmp.eq.s32.totalorder %s28_s17, 0  ;;  %p39_p13 = scmp.eq.s32.totalorder %s2240_s24, 0 }
  0x46   : > { %p2573_p0 = scmp.eq.s32.totalorder %s2313_s25, 1  ;;  %p1893_p1 = scmp.lt.s32.totalorder %s2240_s24, 2 }
  0x47   : > { %s2405_s19 = scalar_select %p29_p9, %s2236_s23, %s31_s8  }
  0x48   : > { %p2399_p3 = por %p2573_p0, %p38_p12  ;;  %p40_p2 = por %p39_p13, %p38_p12 }
  0x49   : > { %s252_s20 = sand.u32 1, %s2236_s23   ;;  %s1668_s14 = sshll.u32 %s2240_s24, 8 }
  0x4a   : > { %s2574_s18 = scalar_select %p2399_p3, 1, 0 }
  0x4b   : > { %s1547_s26 = sshll.u32 %s252_s20, 4  ;;  %s2412_s7 = scalar_lea.hbm %s2558_s0, %s1668_s14 }
  0x4c   : > { %s256_s9 = scalar_lea.vmem [#allocation3], %s1547_s26  ;;  %p2416_p11 = pnand %p1893_p1, %p40_p2 }
  0x4d   : > { %s263_s10 = sshll.u32 %s256_s9, 4  ;;  %s2420_s12 = scalar_lea.sflag [#allocation4], %s252_s20  ;;  %s2414_s10 = int_to_ptr.vmem [resolvable:$true] %s263_s10 }
  0x4e   : > { %s2140_s13 = scalar_lea.hbm %s2412_s7, 256  ;;  %p2142_p6 = pneg %p2416_p11 }
  0x4f   : > { %p2141_p4 = scmp.ne.s32.totalorder %s2412_s7, %s2140_s13  ;;  %s2145_s26 = scalar_lea.hbm %s2558_s0, 512 }
  0x50   : > { %p2146_p7 = scmp.lt.s32.totalorder %s2412_s7, %s2558_s0  ;;  %p2147_p12 = scmp.lt.s32.totalorder %s2145_s26, %s2140_s13 }
  0x51   : > { %p2143_p5 = pnand %p2142_p6, %p2141_p4 }
  0x52   : > { %p2148_p9 = por %p2147_p12, %p2146_p7 }
  0x53   : > { %p2144_p10 = pneg %p2143_p5 }
  0x55   : > { %p2149_p13 = pnand %p2148_p9, %p2144_p10 }
  0x57   : > { %2152 = shalt.err (!%p2149_p13)
}
  0x58   : > { %s2153_s20 = scalar_lea.vmem %s2414_s10, 256  ;;  %s2248_s30 = smov [#allocation3]  }
  0x59   : > { %p2154_p0 = scmp.ne.s32.totalorder %s2414_s10, %s2153_s20  ;;  %s2158_s9 = sshll.u32 %s2248_s30, 4  ;;  %s2159_s9 = int_to_ptr.vmem [resolvable:$false] %s2158_s9 }
  0x5a   : > { %s2160_s8 = scalar_lea.vmem %s2159_s9, 512  ;;  %p2161_p4 = scmp.lt.s32.totalorder %s2414_s10, %s2159_s9 }
  0x5b   : > { %p2156_p1 = pnand %p2154_p0, %p2142_p6  ;;  %p2162_p5 = scmp.lt.s32.totalorder %s2160_s8, %s2153_s20 }
  0x5d   : > { %p2157_p2 = pneg %p2156_p1  ;;  %p2163_p3 = por %p2162_p5, %p2161_p4 }
  0x5f   : > { %p2164_p8 = pnand %p2163_p3, %p2157_p2 }
  0x61   : > { %2167 = shalt.err (!%p2164_p8)
}
  0x62   : > { %s2249_s13 = smov 128   ;;  %s2250_s17 = smov 8  }
  0x63   : > { %1884 = dma.hbm_to_vmem [thread:$0]  (!%p2416_p11), %s2412_s7, 256, %s2414_s10, %s2420_s12, %s2249_s13, %s2249_s13, %s2250_s17  }
  0x64   : > { %p2576_p6 = scmp.ne.s32.totalorder %s2571_s29, 0 }
  0x65   : > { %s2444_s26 = sand.u32 (!%p2576_p6), 1, %s2232_s22   ;;  %p2577_p8 = scmp.ne.s32.totalorder (!%p2576_p6), %s2569_s27, 0 }
  0x66   : > { %275 = sbr.rel (%p2576_p6) target bundleno = 1242 (0x4da), region = 44  ;;  %s1551_s14 = sshll.u32 (!%p2576_p6), %s2444_s26, 4 }
  0x67   : > { %s278_s15 = scalar_lea.sflag (!%p2576_p6), [#allocation4], %s2444_s26  ;;  %s281_s20 = scalar_lea.vmem (!%p2576_p6), [#allocation3], %s1551_s14 }
  0x6b   : > { %2211 = dma.done.wait (%p2577_p8), %s278_s15, 256  }
  0x6c   : > { %2213 = vsyncadd (%p2577_p8), %s278_s15, 4294967040  ;;  %p2578_p3 = scmp.eq.s32.totalorder %s2313_s25, 0 }
  0x6e   : > { %2215 = dma.done.wait (%p2578_p3), [#allocation7], 9216   ;;  %p2579_p11 = pmov %p2578_p3 }
  0x6f   : > { %p2580_p10 = pmov %p2578_p3 }
  0x70   : > { %2217 = vsyncadd (%p2579_p11), [#allocation7], 4294958080 }
  0x71   : > { %2219 = dma.done.wait (%p2580_p10), [#allocation10], 1152   ;;  %p2581_p7 = pmov %p2578_p3 }
  0x72   : > { %v2251_v0 = vmov 0   ;;  %v1944_v1 = vld [vmem:[#allocation6 + $0x78] sm:$0xff]   ;;  %v1946_v3 = vld [vmem:[#allocation6 + $0x70] sm:$0xff]   ;;  %v1948_v5 = vld [vmem:[#allocation6 + $0x68] sm:$0xff]   ;;  %vm354_vm0 = vsmask.f32 4352 }
  0x73   : > { %2221 = vsyncadd (%p2581_p7), [#allocation10], 4294966144  ;;  %328 = vst [vmem:[#allocation2 + $0x4] sm:$0xf] %v2251_v0  ;;  %v1945_v2 = vld [vmem:[#allocation6 + $0x38] sm:$0xff]   ;;  %1702 = vmatprep.subr.bf16.mxu0 %v1944_v1  ;;  %v1947_v4 = vld [vmem:[#allocation6 + $0x30] sm:$0xff]  }
  0x74   : > { %1703 = vmatpush3.bf16.msra.mxu0 %v1945_v2  ;;  %v1949_v6 = vld [vmem:[#allocation6 + $0x28] sm:$0xff]   ;;  %v1950_v7 = vld [vmem:[#allocation6 + $0x60] sm:$0xff]   ;;  %v1952_v9 = vld [vmem:[#allocation6 + $0x58] sm:$0xff]   ;;  %v2252_v40 = vmov 0.0   ;;  %vm2253_vm1 = vmmov 0   ;;  %vm907_vm2 = vcmask 1044480  }
  0x75   : > { %1704 = vmatprep.subr.bf16.mxu0 %v1946_v3  ;;  %v1951_v8 = vld [vmem:[#allocation6 + $0x20] sm:$0xff]   ;;  %v1953_v10 = vld [vmem:[#allocation6 + $0x18] sm:$0xff]   ;;  %v1954_v11 = vld [vmem:[#allocation6 + $0x50] sm:$0xff]   ;;  %s325_s7 = scalar_lea.vmem [#allocation12], %s1551_s14  ;;  %s1677_s11 = sshll.u32 %s2313_s25, 8 }
  0x76   : > { %v329_v12 = vld [vmem:[%s281_s20] sm:$0xff]  ;;  %v330_v13 = vld [vmem:[%s281_s20 + $0x8] sm:$0xff]  ;;  %s1429_s10 = sshll.u32 %s325_s7, 4  ;;  %s2515_s9 = scalar_lea.hbm %s2564_s6, %s1677_s11  ;;  %s2510_s10 = int_to_ptr.vmem [resolvable:$true] %s1429_s10 }
  0x77   : > { %v1955_v14 = vld [vmem:[#allocation6 + $0x10] sm:$0xff]   ;;  %v2462_v15 = vpack.c.bf16 %v330_v13, %v329_v12  ;;  %v1956_v16 = vld [vmem:[#allocation6 + $0x48] sm:$0xff]   ;;  %v1958_v18 = vld [vmem:[#allocation6 + $0x40] sm:$0xff]   ;;  %s1416_s8 = scalar_lea.sflag [#allocation5], %s2444_s26  ;;  %s2168_s13 = scalar_lea.vmem %s2510_s10, 256 }
  0x78   : > { %1705 = vmatpush3.bf16.msra.mxu0 %v1947_v4  ;;  %v1957_v17 = vld [vmem:[#allocation6 + $0x8] sm:$0xff]   ;;  %v1959_v20 = vld [vmem:[#allocation6] sm:$0xff]   ;;  %v1963_v37 = vld [vmem:[#allocation6 + $0xf8] sm:$0xff]   ;;  %p2169_p12 = scmp.ne.s32.totalorder %s2510_s10, %s2168_s13  ;;  %p2582_p9 = scmp.ne.s32.totalorder %s2574_s18, 0 }
  0x79   : > { %1706 = vmatprep.subr.bf16.mxu0 %v1948_v5  ;;  %1698 = vst [vmem:[#allocation2 + $0x8] sm:$0xff] %v2462_v15   ;;  %v1964_v38 = vld [vmem:[#allocation6 + $0xb8] sm:$0xff]   ;;  %1724 = vmatprep.subr.bf16.mxu1 %v1963_v37  ;;  %v1966_v41 = vld [vmem:[#allocation6 + $0xf0] sm:$0xff]   ;;  %v1969_v44 = vld [vmem:[#allocation6 + $0xe8] sm:$0xff]   ;;  %s2254_s25 = smov [#allocation12]  }
  0x7a   : > { %v343_v19 = vld [vmem:[#allocation2 + $0x4] sm:$0x8]  ;;  %v1965_v39 = vld [vmem:[#allocation8 + $0x38] sm:$0xff]   ;;  %1725 = vmatpush3.bf16.msra.mxu1 %v1964_v38  ;;  %v1970_v45 = vld [vmem:[#allocation6 + $0xa8] sm:$0xff]   ;;  %p2170_p13 = pnand %p2169_p12, %p2582_p9  ;;  %s2172_s17 = sshll.u32 %s2254_s25, 4  ;;  %s2173_s17 = int_to_ptr.vmem [resolvable:$false] %s2172_s17 }
  0x7b   : > { %v1967_v42 = vld [vmem:[#allocation6 + $0xb0] sm:$0xff]   ;;  %1726 = vmatprep.subr.bf16.mxu1 %v1966_v41  ;;  %v1971_v46 = vld [vmem:[#allocation8 + $0x28] sm:$0xff]   ;;  %v1972_v47 = vld [vmem:[#allocation6 + $0xe0] sm:$0xff]   ;;  %s2174_s14 = scalar_lea.vmem %s2173_s17, 512  ;;  %p2175_p1 = scmp.lt.s32.totalorder %s2510_s10, %s2173_s17 }
  0x7c   : > { %1707 = vmatpush3.bf16.msra.mxu0 %v1949_v6  ;;  %v1968_v43 = vld [vmem:[#allocation8 + $0x30] sm:$0xff]   ;;  %v1973_v48 = vld [vmem:[#allocation6 + $0xa0] sm:$0xff]   ;;  %v1975_v50 = vld [vmem:[#allocation6 + $0xd8] sm:$0xff]   ;;  %p2171_p0 = pneg %p2170_p13  ;;  %p2176_p2 = scmp.lt.s32.totalorder %s2174_s14, %s2168_s13 }
  0x7d   : > { %1708 = vmatprep.subr.bf16.mxu0 %v1950_v7  ;;  %v1974_v49 = vld [vmem:[#allocation8 + $0x20] sm:$0xff]   ;;  %v1976_v51 = vld [vmem:[#allocation6 + $0x98] sm:$0xff]   ;;  %v1978_v53 = vld [vmem:[#allocation6 + $0xd0] sm:$0xff]  }
  0x7e   : > { %1727 = vmatpush3.bf16.msra.mxu1 %v1967_v42  ;;  %v1977_v52 = vld [vmem:[#allocation8 + $0x18] sm:$0xff]   ;;  %v1979_v54 = vld [vmem:[#allocation6 + $0x90] sm:$0xff]   ;;  %v1981_v56 = vld [vmem:[#allocation6 + $0xc8] sm:$0xff]   ;;  %p2177_p4 = por %p2176_p2, %p2175_p1 }
  0x7f   : > { %1728 = vmatprep.subr.bf16.mxu1 %v1969_v44  ;;  %v1980_v55 = vld [vmem:[#allocation8 + $0x10] sm:$0xff]   ;;  %v1982_v57 = vld [vmem:[#allocation6 + $0x88] sm:$0xff]   ;;  %v1984_v59 = vld [vmem:[#allocation6 + $0xc0] sm:$0xff]  }
  0x80   : > { %1709 = vmatpush3.bf16.msra.mxu0 %v1951_v8  ;;  %v341_v21 = vld [vmem:[#allocation2 + $0x8] sm:$0xf]  ;;  %v342_v22 = vld [vmem:[#allocation2 + $0xc] sm:$0xf]  ;;  %v1983_v58 = vld [vmem:[#allocation8 + $0x8] sm:$0xff]   ;;  %p2178_p5 = pnand %p2177_p4, %p2171_p0 }
  0x81   : > { %1710 = vmatprep.subr.bf16.mxu0 %v1952_v9  ;;  %v1560_v23 = vcombine.low %v343_v19, %v341_v21  ;;  %v1561_v24 = vcombine.low %v342_v22, %v342_v22  ;;  %v1559_v35 = vcombine.low %v341_v21, %v342_v22  ;;  %v1985_v60 = vld [vmem:[#allocation6 + $0x80] sm:$0xff]   ;;  %v1999_v41 = vld [vmem:[#allocation6 + $0x118] sm:$0xff]   ;;  %v2000_v42 = vld [vmem:[#allocation6 + $0x150] sm:$0xff]  }
  0x82   : > { %1729 = vmatpush3.bf16.msra.mxu1 %v1970_v45  ;;  %v1986_v61 = vld [vmem:[#allocation8] sm:$0xff]   ;;  %v2002_v44 = vld [vmem:[#allocation6 + $0x148] sm:$0xff]  }
  0x83   : > { %v356_v25 = vshrl.u32 %v1560_v23, 16  ;;  %v359_v26 = vshll.u32 %v1560_v23, 16  ;;  %v364_v27 = vshrl.u32 %v1561_v24, 16  ;;  %v367_v28 = vshll.u32 %v1561_v24, 16  ;;  %1730 = vmatprep.subr.bf16.mxu1 %v1972_v47  ;;  %v1562_v1 = vld [vmem:[#allocation9] ss:$0 sm:$0xff] }
  0x84   : > { %1711 = vmatpush3.bf16.msra.mxu0 %v1953_v10  ;;  %v561_v10 = vld [vmem:[#allocation2 + $0x4] sm:$0x8]  ;;  %v1996_v37 = vld [vmem:[#allocation6 + $0x160] sm:$0xff]   ;;  %v2003_v45 = vld [vmem:[#allocation6 + $0x108] sm:$0xff]  }
  0x85   : > { %1712 = vmatprep.subr.bf16.mxu0 %v1954_v11  ;;  %v358_v29 = vrot.slane %v356_v25, 3  ;;  %v361_v30 = vrot.slane %v359_v26, 4  ;;  %v366_v31 = vrot.slane %v364_v27, 3  ;;  %v369_v32 = vrot.slane %v367_v28, 4  ;;  %v1990_v27 = vld [vmem:[#allocation6 + $0x178] sm:$0xff]   ;;  %v1997_v38 = vld [vmem:[#allocation6 + $0x120] sm:$0xff]  }
  0x86   : > { %1731 = vmatpush3.bf16.msra.mxu1 %v1973_v48  ;;  %v2005_v47 = vld [vmem:[#allocation6 + $0x100] sm:$0xff]   ;;  %v2009_v48 = vld [vmem:[#allocation6 + $0x1f8] sm:$0xff]  }
  0x87   : > { %v362_v33 = vor.u32 %v361_v30, %v358_v29  ;;  %v370_v34 = vor.u32 %v369_v32, %v366_v31  ;;  %1732 = vmatprep.subr.bf16.mxu1 %v1975_v50  ;;  %v1991_v29 = vld [vmem:[#allocation6 + $0x138] sm:$0xff]   ;;  %v1992_v31 = vld [vmem:[#allocation6 + $0x170] sm:$0xff]  }
  0x88   : > { %1713 = vmatpush3.bf16.msra.mxu0 %v1955_v14 }
  0x89   : > { %1714 = vmatprep.subr.bf16.mxu0 %v1956_v16  ;;  %v371_v36 = vsel %vm354_vm0, %v362_v33, %v370_v34  ;;  %v1993_v33 = vld [vmem:[#allocation6 + $0x130] sm:$0xff]  }
  0x8a   : > { %538 = vmatprep.mubr.bf16.mxu0 %v371_v36  ;;  %1733 = vmatpush3.bf16.msra.mxu1 %v1976_v51  ;;  %v1995_v36 = vld [vmem:[#allocation6 + $0x128] sm:$0xff]   ;;  %v1584_v51 = vld [vmem:[#allocation9 + $0x1] ss:$0 sm:$0xff] }
  0x8b   : > { %1734 = vmatprep.subr.bf16.mxu1 %v1978_v53 }
  0x8c   : > { %1715 = vmatpush3.bf16.msra.mxu0 %v1957_v17 }
  0x8d   : > { %1716 = vmatprep.subr.bf16.mxu0 %v1958_v18 }
  0x8e   : > { %1735 = vmatpush3.bf16.msra.mxu1 %v1979_v54  ;;  %v1601_v54 = vld [vmem:[#allocation9 + $0x2] ss:$0 sm:$0xff] }
  0x8f   : > { %1736 = vmatprep.subr.bf16.mxu1 %v1981_v56 }
  0x90   : > { %1717 = vmatpush3.bf16.msra.mxu0 %v1959_v20 }
  0x91   : > { %1808 = vmatprep.subr.bf16.mxu0 %v2252_v40 }
  0x92   : > { %1737 = vmatpush3.bf16.msra.mxu1 %v1982_v57 }
  0x93   : > { %539 = vmatmul.mubr.bf16.vlgmr.msra.gmra.mxu0 %v1559_v35  ;;  %1738 = vmatprep.subr.bf16.mxu1 %v1984_v59  ;;  %v1994_v35 = vld [vmem:[#allocation6 + $0x168] sm:$0xff]  }
  0x94   : > { %1809 = vmatpush3.bf16.msra.mxu0 %v1965_v39  ;;  %1824 = vmatprep.mubr.msk.bf16.mxu0 %vm2253_vm1, %v2252_v40  ;;  %v1998_v39 = vld [vmem:[#allocation6 + $0x158] sm:$0xff]  }
  0x95   : > { %1810 = vmatprep.subr.bf16.mxu0 %v2252_v40 }
  0x96   : > { %1739 = vmatpush3.bf16.msra.mxu1 %v1985_v60 }
  0x97   : > { %1755 = vmatprep.subr.bf16.mxu1 %v1990_v27  ;;  %v2024_v27 = vld [vmem:[#allocation6 + $0x180] sm:$0xff]  }
  0x98   : > { %1811 = vmatpush3.bf16.msra.mxu0 %v1968_v43  ;;  %v2001_v43 = vld [vmem:[#allocation6 + $0x110] sm:$0xff]  }
  0x99   : > { %1812 = vmatprep.subr.bf16.mxu0 %v2252_v40 }
  0x9c   : > { %1813 = vmatpush3.bf16.msra.mxu0 %v1971_v46  ;;  %v2004_v46 = vld [vmem:[#allocation6 + $0x140] sm:$0xff]  }
  0x9d   : > { %1814 = vmatprep.subr.bf16.mxu0 %v2252_v40 }
  0xa0   : > { %1815 = vmatpush3.bf16.msra.mxu0 %v1974_v49  ;;  %v2010_v49 = vld [vmem:[#allocation6 + $0x1b8] sm:$0xff]  }
  0xa1   : > { %1816 = vmatprep.subr.bf16.mxu0 %v2252_v40 }
  0xa4   : > { %1817 = vmatpush3.bf16.msra.mxu0 %v1977_v52 }
  0xa5   : > { %1818 = vmatprep.subr.bf16.mxu0 %v2252_v40 }
  0xa8   : > { %1819 = vmatpush3.bf16.msra.mxu0 %v1980_v55 }
  0xa9   : > { %1820 = vmatprep.subr.bf16.mxu0 %v2252_v40 }
  0xac   : > { %1821 = vmatpush3.bf16.msra.mxu0 %v1983_v58 }
  0xad   : > { %1822 = vmatprep.subr.bf16.mxu0 %v2252_v40 }
  0xb0   : > { %1823 = vmatpush3.bf16.msra.mxu0 %v1986_v61 }
  0xb1   : > { %1777 = vmatprep.subr.bf16.mxu0 %v2009_v48 }
  0xb3   : > { %1825 = vmatmul.mubr.bf16.vlgmr.msra.gmra.mxu0 %v2462_v15 }
  0xb4   : > { %1778 = vmatpush3.bf16.msra.mxu0 %v2010_v49 }
 0x153   : > { %v1718_v62 = vpop.f32.mrf.mxu0 }
 0x155   : > { %v1719_v63 = vpop.f32.mrf.mxu0 }
 0x156   : > { %v1720_v0 = vadd.f32 %v1719_v63, %v1718_v62 }
 0x157   : > { %v1721_v2 = vpop.f32.mrf.mxu0 }
 0x158   : > { %v541_v4 = vadd.f32 %v1720_v0, %v1562_v1 }
 0x159   : > { %v1722_v3 = vpop.f32.mrf.mxu0 }
 0x15a   : > { %v1723_v5 = vadd.f32 %v1722_v3, %v1721_v2  ;;  %v547_v7 = vmax.f32 %v541_v4, 0.0 }
 0x15c   : > { %v544_v6 = vadd.f32 %v1723_v5, %v1562_v1  ;;  %v893_v5 = vld [vmem:[#allocation2 + $0x4] sm:$0x8] }
 0x15e   : > { %v548_v8 = vmax.f32 %v544_v6, 0.0 }
 0x160   : > { %v1686_v9 = vpack.c.bf16 %v548_v8, %v547_v7 }
 0x162   : > { %1699 = vst [vmem:[#allocation2 + $0x8] sm:$0xff] %v1686_v9  }
 0x169   : > { %v559_v11 = vld [vmem:[#allocation2 + $0x8] sm:$0xf]  ;;  %v560_v12 = vld [vmem:[#allocation2 + $0xc] sm:$0xf] }
 0x16a   : > { %v1582_v13 = vcombine.low %v561_v10, %v559_v11  ;;  %v1583_v14 = vcombine.low %v560_v12, %v560_v12  ;;  %v1581_v26 = vcombine.low %v559_v11, %v560_v12 }
 0x16c   : > { %v573_v16 = vshrl.u32 %v1582_v13, 16  ;;  %v576_v15 = vshll.u32 %v1582_v13, 16  ;;  %v581_v17 = vshrl.u32 %v1583_v14, 16  ;;  %v584_v18 = vshll.u32 %v1583_v14, 16  ;;  %v2011_v14 = vld [vmem:[#allocation6 + $0x1f0] sm:$0xff]  }
 0x16d   : > { %1779 = vmatprep.subr.bf16.mxu0 %v2011_v14 }
 0x16e   : > { %v575_v19 = vrot.slane %v573_v16, 3  ;;  %v578_v20 = vrot.slane %v576_v15, 4  ;;  %v583_v21 = vrot.slane %v581_v17, 3  ;;  %v586_v22 = vrot.slane %v584_v18, 4  ;;  %v2012_v16 = vld [vmem:[#allocation6 + $0x1b0] sm:$0xff]   ;;  %v2013_v15 = vld [vmem:[#allocation6 + $0x1e8] sm:$0xff]  }
 0x16f   : > { %1780 = vmatpush3.bf16.msra.mxu0 %v2012_v16  ;;  %v2014_v17 = vld [vmem:[#allocation6 + $0x1a8] sm:$0xff]   ;;  %v2015_v18 = vld [vmem:[#allocation6 + $0x1e0] sm:$0xff]  }
 0x170   : > { %v579_v23 = vor.u32 %v578_v20, %v575_v19  ;;  %v587_v24 = vor.u32 %v586_v22, %v583_v21  ;;  %1781 = vmatprep.subr.bf16.mxu0 %v2013_v15  ;;  %v2016_v19 = vld [vmem:[#allocation6 + $0x1a0] sm:$0xff]   ;;  %v2017_v20 = vld [vmem:[#allocation6 + $0x1d8] sm:$0xff]   ;;  %v2019_v22 = vld [vmem:[#allocation6 + $0x1d0] sm:$0xff]  }
 0x171   : > { %v2018_v21 = vld [vmem:[#allocation6 + $0x198] sm:$0xff]  }
 0x172   : > { %v588_v25 = vsel %vm354_vm0, %v579_v23, %v587_v24  ;;  %v2020_v23 = vld [vmem:[#allocation6 + $0x190] sm:$0xff]   ;;  %v2021_v24 = vld [vmem:[#allocation6 + $0x1c8] sm:$0xff]  }
 0x173   : > { %756 = vmatprep.mubr.bf16.mxu1 %v588_v25  ;;  %v870_v28 = vpop.f32.mrf.mxu0  ;;  %1782 = vmatpush3.bf16.msra.mxu0 %v2014_v17  ;;  %v2022_v25 = vld [vmem:[#allocation6 + $0x188] sm:$0xff]  }
 0x174   : > { %757 = vmatmul.mubr.bf16.vlgmr.msra.gmra.mxu1 %v1581_v26  ;;  %v871_v58 = vadd.f32 %v1601_v54, %v870_v28  ;;  %1783 = vmatprep.subr.bf16.mxu0 %v2015_v18  ;;  %v2023_v26 = vld [vmem:[#allocation6 + $0x1c0] sm:$0xff]  }
 0x175   : > { %v1826_v30 = vpop.f32.mrf.mxu0  ;;  %1756 = vmatpush3.bf16.msra.mxu1 %v1991_v29  ;;  %v2028_v28 = vld [vmem:[#allocation11 + $0x38] sm:$0xff]   ;;  %v2029_v29 = vld [vmem:[#allocation11 + $0x30] sm:$0xff]  }
 0x176   : > { %1757 = vmatprep.subr.bf16.mxu1 %v1992_v31  ;;  %v2030_v30 = vld [vmem:[#allocation11 + $0x28] sm:$0xff]  }
 0x177   : > { %v873_v32 = vpop.f32.mrf.mxu0  ;;  %1784 = vmatpush3.bf16.msra.mxu0 %v2016_v19 }
 0x178   : > { %v874_v63 = vadd.f32 %v1601_v54, %v873_v32  ;;  %1785 = vmatprep.subr.bf16.mxu0 %v2017_v20  ;;  %v2032_v54 = vld [vmem:[#allocation11 + $0x18] sm:$0xff]  }
 0x179   : > { %v1827_v34 = vpop.f32.mrf.mxu0  ;;  %1758 = vmatpush3.bf16.msra.mxu1 %v1993_v33 }
 0x17a   : > { %1759 = vmatprep.subr.bf16.mxu1 %v1994_v35  ;;  %v1615_v34 = vld [vmem:[#allocation9 + $0x3] ss:$0 sm:$0xff] }
 0x17b   : > { %1786 = vmatpush3.bf16.msra.mxu0 %v2018_v21 }
 0x17c   : > { %1787 = vmatprep.subr.bf16.mxu0 %v2019_v22 }
 0x17d   : > { %1760 = vmatpush3.bf16.msra.mxu1 %v1995_v36 }
 0x17e   : > { %1761 = vmatprep.subr.bf16.mxu1 %v1996_v37 }
 0x17f   : > { %1788 = vmatpush3.bf16.msra.mxu0 %v2020_v23 }
 0x180   : > { %1789 = vmatprep.subr.bf16.mxu0 %v2021_v24 }
 0x181   : > { %1762 = vmatpush3.bf16.msra.mxu1 %v1997_v38 }
 0x182   : > { %1763 = vmatprep.subr.bf16.mxu1 %v1998_v39 }
 0x183   : > { %1790 = vmatpush3.bf16.msra.mxu0 %v2022_v25 }
 0x184   : > { %1791 = vmatprep.subr.bf16.mxu0 %v2023_v26 }
 0x185   : > { %1764 = vmatpush3.bf16.msra.mxu1 %v1999_v41 }
 0x186   : > { %1765 = vmatprep.subr.bf16.mxu1 %v2000_v42 }
 0x187   : > { %1792 = vmatpush3.bf16.msra.mxu0 %v2024_v27 }
 0x189   : > { %1766 = vmatpush3.bf16.msra.mxu1 %v2001_v43 }
 0x18a   : > { %1767 = vmatprep.subr.bf16.mxu1 %v2002_v44  ;;  %v1101_v44 = vld [vmem:[#allocation2 + $0x4] sm:$0x8] }
 0x18d   : > { %1768 = vmatpush3.bf16.msra.mxu1 %v2003_v45 }
 0x18e   : > { %1769 = vmatprep.subr.bf16.mxu1 %v2004_v46 }
 0x191   : > { %1770 = vmatpush3.bf16.msra.mxu1 %v2005_v47 }
 0x192   : > { %1828 = vmatprep.subr.bf16.mxu1 %v2252_v40 }
 0x234   : > { %v1740_v50 = vpop.f32.mrf.mxu1 }
 0x236   : > { %v1741_v52 = vpop.f32.mrf.mxu1 }
 0x237   : > { %v1742_v53 = vadd.f32 %v1741_v52, %v1740_v50 }
 0x238   : > { %v1743_v55 = vpop.f32.mrf.mxu1 }
 0x239   : > { %v759_v56 = vadd.f32 %v1742_v53, %v1584_v51  ;;  %v2031_v53 = vld [vmem:[#allocation11 + $0x20] sm:$0xff]  }
 0x23a   : > { %v1744_v57 = vpop.f32.mrf.mxu1 }
 0x23b   : > { %v765_v59 = vmax.f32 %v759_v56, 0.0  ;;  %v1745_v60 = vadd.f32 %v1744_v57, %v1743_v55  ;;  %v2033_v55 = vld [vmem:[#allocation11 + $0x10] sm:$0xff]   ;;  %v2034_v56 = vld [vmem:[#allocation11 + $0x8] sm:$0xff]   ;;  %v2035_v57 = vld [vmem:[#allocation11] sm:$0xff]  }
 0x23d   : > { %v762_v61 = vadd.f32 %v1745_v60, %v1584_v51  ;;  %v2479_v62 = vadd.f32 %v871_v58, %v765_v59  ;;  %v1637_v59 = vld [vmem:[#allocation9 + $0x4] ss:$0 sm:$0xff] }
 0x23f   : > { %v766_v0 = vmax.f32 %v762_v61, 0.0  ;;  %v879_v2 = vmax.f32 %v2479_v62, 0.0 }
 0x241   : > { %v2481_v1 = vadd.f32 %v874_v63, %v766_v0 }
 0x243   : > { %v880_v3 = vmax.f32 %v2481_v1, 0.0 }
 0x245   : > { %v1691_v4 = vpack.c.bf16 %v880_v3, %v879_v2 }
 0x247   : > { %1700 = vst [vmem:[#allocation2 + $0x8] sm:$0xff] %v1691_v4  }
 0x24e   : > { %v891_v6 = vld [vmem:[#allocation2 + $0x8] sm:$0xf]  ;;  %v2007_v8 = vld [vmem:[#allocation2 + $0xc] ss:$0 sps:$4 sm:$0x77]  }
 0x24f   : > { %v1613_v7 = vcombine.low %v893_v5, %v891_v6  ;;  %v892_v9 = vld [vmem:[#allocation2 + $0xc] sm:$0xf]  ;;  %v909_v11 = vrot.slane %v2007_v8, 3 }
 0x250   : > { %v1612_v13 = vcombine.low %v891_v6, %v892_v9 }
 0x251   : > { %v908_v10 = vrot.slane %v1613_v7, 3 }
 0x253   : > { %v910_v12 = vsel %vm907_vm2, %v908_v10, %v909_v11 }
 0x254   : > { %1078 = vmatprep.mubr.bf16.mxu1 %v910_v12 }
 0x255   : > { %1079 = vmatmul.mubr.bf16.vlgmr.msra.gmra.mxu1 %v1612_v13  ;;  %v1654_v13 = vld [vmem:[%s2563_s5] ss:$0 sm:$0xff] }
 0x256   : > { %1844 = vmatprep.mubr.msk.bf16.mxu1 %vm2253_vm1, %v2252_v40  ;;  %1829 = vmatpush3.bf16.msra.mxu1 %v2028_v28 }
 0x257   : > { %1830 = vmatprep.subr.bf16.mxu1 %v2252_v40 }
 0x25a   : > { %1831 = vmatpush3.bf16.msra.mxu1 %v2029_v29 }
 0x25b   : > { %1832 = vmatprep.subr.bf16.mxu1 %v2252_v40 }
 0x25e   : > { %1833 = vmatpush3.bf16.msra.mxu1 %v2030_v30 }
 0x25f   : > { %1834 = vmatprep.subr.bf16.mxu1 %v2252_v40 }
 0x262   : > { %1835 = vmatpush3.bf16.msra.mxu1 %v2031_v53 }
 0x263   : > { %1836 = vmatprep.subr.bf16.mxu1 %v2252_v40 }
 0x266   : > { %1837 = vmatpush3.bf16.msra.mxu1 %v2032_v54 }
 0x267   : > { %1838 = vmatprep.subr.bf16.mxu1 %v2252_v40 }
 0x26a   : > { %1839 = vmatpush3.bf16.msra.mxu1 %v2033_v55 }
 0x26b   : > { %1840 = vmatprep.subr.bf16.mxu1 %v2252_v40 }
 0x26e   : > { %1841 = vmatpush3.bf16.msra.mxu1 %v2034_v56 }
 0x26f   : > { %1842 = vmatprep.subr.bf16.mxu1 %v2252_v40 }
 0x272   : > { %1843 = vmatpush3.bf16.msra.mxu1 %v2035_v57 }
 0x315   : > { %v1771_v31 = vpop.f32.mrf.mxu1 }
 0x317   : > { %v1772_v32 = vpop.f32.mrf.mxu1 }
 0x318   : > { %v1773_v33 = vadd.f32 %v1772_v32, %v1771_v31 }
 0x319   : > { %v1774_v35 = vpop.f32.mrf.mxu1 }
 0x31a   : > { %v1081_v37 = vadd.f32 %v1773_v33, %v1615_v34 }
 0x31b   : > { %v1775_v36 = vpop.f32.mrf.mxu1 }
 0x31c   : > { %v1776_v38 = vadd.f32 %v1775_v36, %v1774_v35  ;;  %v1087_v41 = vmax.f32 %v1081_v37, 0.0 }
 0x31e   : > { %v1084_v39 = vadd.f32 %v1776_v38, %v1615_v34 }
 0x320   : > { %v1088_v42 = vmax.f32 %v1084_v39, 0.0 }
 0x322   : > { %v1696_v43 = vpack.c.bf16 %v1088_v42, %v1087_v41 }
 0x324   : > { %1701 = vst [vmem:[#allocation2 + $0x8] sm:$0xff] %v1696_v43  }
 0x32b   : > { %v1099_v45 = vld [vmem:[#allocation2 + $0x8] sm:$0xf]  ;;  %v2026_v47 = vld [vmem:[#allocation2 + $0xc] ss:$0 sps:$4 sm:$0x77]  }
 0x32c   : > { %v1635_v46 = vcombine.low %v1101_v44, %v1099_v45  ;;  %v1100_v48 = vld [vmem:[#allocation2 + $0xc] sm:$0xf]  ;;  %v1116_v50 = vrot.slane %v2026_v47, 3 }
 0x32d   : > { %v1634_v52 = vcombine.low %v1099_v45, %v1100_v48 }
 0x32e   : > { %v1115_v49 = vrot.slane %v1635_v46, 3 }
 0x330   : > { %v1117_v51 = vsel %vm907_vm2, %v1115_v49, %v1116_v50 }
 0x331   : > { %1285 = vmatprep.mubr.bf16.mxu0 %v1117_v51 }
 0x332   : > { %1286 = vmatmul.mubr.bf16.vlgmr.msra.gmra.mxu0 %v1634_v52 }
 0x3f2   : > { %v1793_v58 = vpop.f32.mrf.mxu0 }
 0x3f4   : > { %v1794_v60 = vpop.f32.mrf.mxu0 }
 0x3f5   : > { %v1795_v61 = vadd.f32 %v1794_v60, %v1793_v58 }
 0x3f6   : > { %v1796_v63 = vpop.f32.mrf.mxu0 }
 0x3f7   : > { %v1288_v0 = vadd.f32 %v1795_v61, %v1637_v59 }
 0x3f8   : > { %v1797_v4 = vpop.f32.mrf.mxu0 }
 0x3f9   : > { %v1294_v5 = vmax.f32 %v1288_v0, 0.0  ;;  %v1798_v6 = vadd.f32 %v1797_v4, %v1796_v63 }
 0x3fb   : > { %v1291_v7 = vadd.f32 %v1798_v6, %v1637_v59  ;;  %v1296_v8 = vadd.f32 %v1294_v5, %v879_v2 }
 0x3fd   : > { %v1295_v9 = vmax.f32 %v1291_v7, 0.0  ;;  %v1298_v10 = vmax.f32 %v1296_v8, 0.0 }
 0x3ff   : > { %v1297_v40 = vadd.f32 %v1295_v9, %v880_v3 }
 0x401   : > { %v1299_v11 = vmax.f32 %v1297_v40, 0.0 }
 0x403   : > { %v1300_v12 = vpack.c.bf16 %v1299_v11, %v1298_v10 }
 0x405   : > { %1845 = vmatmul.mubr.bf16.vlgmr.msra.gmra.mxu1 %v1300_v12 }
 0x4c5   : > { %v1406_v14 = vpop.f32.mrf.mxu1 }
 0x4c6   : > { %v1407_v62 = vadd.f32 %v1654_v13, %v1406_v14 }
 0x4c7   : > { %v1846_v2 = vpop.f32.mrf.mxu1 }
 0x4c8   : > { %1413 = vst [vmem:[%s325_s7] sm:$0xff] %v1407_v62 }
 0x4c9   : > { %v1409_v1 = vpop.f32.mrf.mxu1 }
 0x4ca   : > { %v1410_v3 = vadd.f32 %v1654_v13, %v1409_v1 }
 0x4cb   : > { %v1847_v16 = vpop.f32.mrf.mxu1 }
 0x4cc   : > { %1414 = vst [vmem:[%s325_s7 + $0x8] sm:$0xff] %v1410_v3 }
 0x4cd   : > { %2181 = shalt.err (!%p2178_p5)
}
 0x4ce   : > { %s2182_s15 = scalar_lea.hbm %s2515_s9, 256  ;;  %s2186_s29 = scalar_lea.hbm %s2564_s6, 512 }
 0x4cf   : > { %p2183_p6 = scmp.ne.s32.totalorder %s2515_s9, %s2182_s15  ;;  %p2187_p11 = scmp.lt.s32.totalorder %s2515_s9, %s2564_s6 }
 0x4d0   : > { %p2188_p10 = scmp.lt.s32.totalorder %s2186_s29, %s2182_s15 }
 0x4d1   : > { %p2184_p8 = pnand %p2183_p6, %p2582_p9 }
 0x4d2   : > { %p2189_p7 = por %p2188_p10, %p2187_p11 }
 0x4d3   : > { %p2185_p3 = pneg %p2184_p8 }
 0x4d5   : > { %p2190_p12 = pnand %p2189_p7, %p2185_p3 }
 0x4d7   : > { %2193 = shalt.err (!%p2190_p12)
}
 0x4d8   : > { %s2255_s12 = smov 128   ;;  %s2256_s30 = smov 8  }
 0x4d9   : > { %1866 = dma.vmem_to_hbm [thread:$0]  (%p2582_p9), %s2510_s10, 256, %s2515_s9, %s1416_s8, %s2255_s12, %s2255_s12, %s2256_s30  }
 0x4da PF: > { %s1444_s13 = sand.u32 1, %s2228_s21   ;;  %p2583_p13 = scmp.ne.s32.totalorder %s2570_s28, 0 }
 0x4db   : > { %p2584_p0 = scmp.ge.s32.totalorder %s2240_s24, 2  ;;  %s1445_s25 = scalar_lea.sflag [#allocation5], %s1444_s13 }
 0x4dd   : > { %p1886_p1 = pnand %p2584_p0, %p2583_p13 }
 0x4df   : > { %p1887_p2 = pneg %p1886_p1 }
 0x4e1   : > { %2223 = dma.done.wait (%p1887_p2), %s1445_s25, 256  }
 0x4e2   : > { %2225 = vsyncadd (%p1887_p2), %s1445_s25, 4294967040  ;;  %p21_p4 = scmp.ge.s32.totalorder %s2389_s16, 4   ;;  %s2585_s21 = smov %s2232_s22 }
 0x4e3   : > { %s2586_s22 = smov %s2236_s23  ;;  %s2587_s23 = smov %s2405_s19 }
 0x4e4   : > { %s2588_s24 = smov %s2389_s16  ;;  %23 = sbr.rel (!%p21_p4) target bundleno = 7 (0x7), region = 108 }
 0x4e9   :  { %1450 = vsyncpa [#allocation4], 1 }
 0x4ea   :  { %1452 = vsyncpa [#allocation4 + $0x1], 1 }
 0x4eb   :  { %1453 = vsyncpa [#allocation7], 1 }
 0x4ec   :  { %1454 = vsyncpa [#allocation10], 1 }
 0x4ed   :  { %1455 = vsyncpa [#allocation5], 1 }
 0x4ee   :  { %1457 = vsyncpa [#allocation5 + $0x1], 1 }

</bundles_post_ra>
